<compile_context>
chip_gen: v7x
topology: tpu7x:2x2x1
jax: 0.10.0
libtpu: 0.0.40
codegen_flags: <defaults>
</compile_context>

<pallas_src>
import functools

import jax
import jax.numpy as jnp
from jax import lax
from jax.experimental import pallas as pl
from jax.experimental.pallas import tpu as pltpu

EPS = 1e-5
MOMENTUM = 0.9

_LANE = 128
_BLOCK_BYTES = 4 * 1024 * 1024      # per-block DMA granularity target
_VMEM_MARGIN = 4 * 1024 * 1024      # headroom for params / compiler internals


def _bn_kernel(x_ref, gamma_ref, beta_ref,
               y_ref, bmean_ref, bvar_ref,
               k_sc, sum_sc, sumsq_sc, scale_sc, shift_sc, *cache,
               m_total, eps, cache_x, n_blk, hw_blk):
    """Two-pass BN over (N_BLK, C_BLK, HW_BLK) blocks of the (N, C, H*W) tensor.

    Grid = (c_groups, pass, n_blocks, hw_blocks).
    """
    xcache = cache[0] if cache_x else None
    p = pl.program_id(1)            # 0 = reduce pass, 1 = normalize pass
    n = pl.program_id(2)
    h = pl.program_id(3)
    is_first = jnp.logical_and(n == 0, h == 0)
    is_last = jnp.logical_and(n == pl.num_programs(2) - 1,
                              h == pl.num_programs(3) - 1)

    def _hw_start():
        s = h * hw_blk
        if hw_blk % _LANE == 0:
            s = pl.multiple_of(s, _LANE)
        return s

    @pl.when(jnp.logical_and(p == 0, is_first))
    def _init():
        # Per-channel pre-shift from the first block: the shifted
        # E[(x-k)^2] - (E[x-k])^2 form is robust against catastrophic
        # cancellation when |mean| >> std.
        x = x_ref[...].astype(jnp.float32)
        k_sc[...] = jnp.mean(x, axis=(0, 2), keepdims=True)[0]
        sum_sc[...] = jnp.zeros_like(sum_sc)
        sumsq_sc[...] = jnp.zeros_like(sumsq_sc)

    @pl.when(p == 0)
    def _accumulate():
        x_raw = x_ref[...]                               # (N_BLK, C_BLK, HW_BLK)
        x = x_raw.astype(jnp.float32)
        if cache_x:
            # Stash the block in the persistent slab so pass 1 never re-reads HBM.
            xcache[pl.ds(n * n_blk, n_blk), :, pl.ds(_hw_start(), hw_blk)] = x_raw
        xs = x - k_sc[...]                               # (C_BLK,1) broadcasts
        sum_sc[...] += jnp.sum(xs, axis=(0, 2), keepdims=True)[0]
        sumsq_sc[...] += jnp.sum(xs * xs, axis=(0, 2), keepdims=True)[0]

    @pl.when(jnp.logical_and(p == 0, is_last))
    def _finalize():
        inv_m = jnp.float32(1.0 / m_total)
        dmean = sum_sc[...] * inv_m                      # (C_BLK, 1)
        var = jnp.maximum(sumsq_sc[...] * inv_m - dmean * dmean, 0.0)
        mean = k_sc[...] + dmean
        istd = lax.rsqrt(var + jnp.float32(eps))
        scale = gamma_ref[...].astype(jnp.float32) * istd
        # Precompute the affine once here (not per pass-1 block).
        scale_sc[...] = scale
        shift_sc[...] = beta_ref[...].astype(jnp.float32) - mean * scale
        bmean_ref[...] = mean.astype(bmean_ref.dtype)
        bvar_ref[...] = var.astype(bvar_ref.dtype)

    @pl.when(p == 1)
    def _normalize():
        if cache_x:
            x = xcache[pl.ds(n * n_blk, n_blk), :, pl.ds(_hw_start(), hw_blk)]
            x = x.astype(jnp.float32)
        else:
            x = x_ref[...].astype(jnp.float32)
        y = x * scale_sc[...] + shift_sc[...]            # (C_BLK,1) broadcasts
        y_ref[...] = y.astype(y_ref.dtype)


def _largest_divisor(n, cap, step):
    """Largest multiple of `step` that divides `n` and is <= cap, else None."""
    cap = min(cap, n)
    d = (cap // step) * step
    while d >= step:
        if n % d == 0:
            return d
        d -= step
    return None


def _vmem_capacity_bytes():
    try:
        cap = getattr(pltpu.get_tpu_info(), "vmem_capacity_bytes", None)
        if cap:
            return int(cap)
    except Exception:
        pass
    return 64 * 1024 * 1024          # v7x per-core VMEM: safe lower bound


def batch_norm_pallas(x_nchw, gamma, beta, moving_mean, moving_var,
                      eps=EPS, momentum=MOMENTUM):
    """BatchNorm forward (training semantics of the PyTorch module).

    Args:
      x_nchw:       (N, C, H, W)
      gamma, beta, moving_mean, moving_var: (1, C, 1, 1)
    Returns:
      (Y, new_moving_mean, new_moving_var)
    """
    N, C, H, W = x_nchw.shape
    HW = H * W
    M = N * HW
    item = jnp.dtype(x_nchw.dtype).itemsize
    pack = {4: 8, 2: 16, 1: 32}.get(item, 8)   # sublane pack per dtype

    # NCHW -> (N, C, H*W): pure reshape, no transpose / extra HBM traffic.
    x3 = x_nchw.reshape(N, C, HW)
    gamma2 = gamma.reshape(C, 1).astype(jnp.float32)
    beta2 = beta.reshape(C, 1).astype(jnp.float32)

    # ---- tiling --------------------------------------------------------
    # Lane-dense HW tile: largest multiple-of-128 divisor of HW (<= 2048);
    # otherwise the full dim (allowed by the (8,128) rule).
    hw_blk = _largest_divisor(HW, 2048, _LANE) or HW

    rows_budget = max(pack, _BLOCK_BYTES // (hw_blk * item))
    # Keep >= 2 channel groups when possible so v7x's two TensorCores both
    # get work along the "parallel" channel axis.
    c_cap = C // 2 if C >= 2 * pack else C
    c_blk = _largest_divisor(C, min(rows_budget, c_cap), pack)
    if c_blk is None:
        c_blk = C if C <= rows_budget else (_largest_divisor(C, rows_budget, 1) or C)
    # TODO(synk): for tiny C (single channel group) a 2-stage cross-core
    # combine over N/HW would be needed to use both v7x TensorCores.

    # Fold batch into the block too (amortizes ~0.35us/step overhead when HW
    # is small), up to the ~4 MiB per-block target.
    n_cap = max(1, _BLOCK_BYTES // (c_blk * hw_blk * item))
    n_blk = _largest_divisor(N, n_cap, 1) or 1

    block_bytes = n_blk * c_blk * hw_blk * item

    # ---- VMEM budget / slab-cache gate ----------------------------------
    vmem_cap = _vmem_capacity_bytes()
    vmem_limit = max(32 * 1024 * 1024,
                     min(int(vmem_cap * 3 // 4), 96 * 1024 * 1024))
    c_pad = -(-c_blk // pack) * pack
    hw_pad = -(-HW // _LANE) * _LANE
    slab_bytes = N * c_pad * hw_pad * item
    # x blocks and y blocks are each double-buffered by the pipeline.
    cache_x = slab_bytes + 4 * block_bytes + _VMEM_MARGIN <= vmem_limit

    n_c, n_n, n_hw = C // c_blk, N // n_blk, HW // hw_blk
    grid = (n_c, 2, n_n, n_hw)      # (channel groups, pass, batch blks, hw blks)

    kernel = functools.partial(_bn_kernel, m_total=float(M), eps=float(eps),
                               cache_x=cache_x, n_blk=n_blk, hw_blk=hw_blk)

    if cache_x:
        # Pass 1 reads x from the VMEM slab; pin its index_map to one block so
        # x is only ever read from HBM once (traffic: read + write, not 2x read).
        x_index = lambda ci, p, n, h: (n * (1 - p), ci, h * (1 - p))
    else:
        x_index = lambda ci, p, n, h: (n, ci, h)
    # During pass 0 (p == 0) y stays pinned to one never-written block (see
    # NOTE at top of file); during pass 1 it walks every (n, ci, h) block.
    y_index = lambda ci, p, n, h: (n * p, ci, h * p)
    vec_index = lambda ci, p, n, h: (ci, 0)

    scratch = [
        pltpu.VMEM((c_blk, 1), jnp.float32),   # k: per-channel pre-shift
        pltpu.VMEM((c_blk, 1), jnp.float32),   # running shifted sum
        pltpu.VMEM((c_blk, 1), jnp.float32),   # running shifted sum of squares
        pltpu.VMEM((c_blk, 1), jnp.float32),   # finalized scale = gamma/std
        pltpu.VMEM((c_blk, 1), jnp.float32),   # finalized shift = beta - mean*scale
    ]
    if cache_x:
        scratch.append(pltpu.VMEM((N, c_blk, HW), x_nchw.dtype))  # slab cache

    out_shapes = (
        jax.ShapeDtypeStruct((N, C, HW), x_nchw.dtype),   # Y
        jax.ShapeDtypeStruct((C, 1), jnp.float32),        # batch mean
        jax.ShapeDtypeStruct((C, 1), jnp.float32),        # batch var (biased)
    )

    y3, bmean, bvar = pl.pallas_call(
        kernel,
        out_shape=out_shapes,
        grid_spec=pltpu.PrefetchScalarGridSpec(
            num_scalar_prefetch=0,
            grid=grid,
            in_specs=[
                pl.BlockSpec((n_blk, c_blk, hw_blk), x_index),
                pl.BlockSpec((c_blk, 1), vec_index),
                pl.BlockSpec((c_blk, 1), vec_index),
            ],
            out_specs=[
                pl.BlockSpec((n_blk, c_blk, hw_blk), y_index),
                pl.BlockSpec((c_blk, 1), vec_index),
                pl.BlockSpec((c_blk, 1), vec_index),
            ],
            scratch_shapes=scratch,
        ),
        compiler_params=pltpu.CompilerParams(
            dimension_semantics=("parallel", "arbitrary", "arbitrary",
                                 "arbitrary"),
            vmem_limit_bytes=vmem_limit,
        ),
    )(x3, gamma2, beta2)

    y = y3.reshape(N, C, H, W)

    # EMA update of running stats (tiny; XLA fuses this for free).
    bmean4 = bmean.reshape(1, C, 1, 1).astype(moving_mean.dtype)
    bvar4 = bvar.reshape(1, C, 1, 1).astype(moving_var.dtype)
    new_mm = momentum * moving_mean + (1.0 - momentum) * bmean4
    new_mv = momentum * moving_var + (1.0 - momentum) * bvar4
    return y, new_mm, new_mv


def _reference_batch_norm(x, gamma, beta, moving_mean, moving_var,
                          eps=EPS, momentum=MOMENTUM):
    """Pure-JAX reference mirroring the PyTorch `batch_norm` (training branch)."""
    mean = jnp.mean(x, axis=(0, 2, 3), keepdims=True)
    var = jnp.mean((x - mean) ** 2, axis=(0, 2, 3), keepdims=True)
    x_hat = (x - mean) / jnp.sqrt(var + eps)
    y = gamma * x_hat + beta
    new_mm = momentum * moving_mean + (1.0 - momentum) * mean
    new_mv = momentum * moving_var + (1.0 - momentum) * var
    return y, new_mm, new_mv


if __name__ == "__main__":
    key = jax.random.PRNGKey(0)
    N, C, H, W = 2, 4, 16, 16

    # Non-zero per-channel offsets so the shifted-variance path is exercised.
    x = jax.random.normal(key, (N, C, H, W), dtype=jnp.float32)
    x = x + 3.0 * jnp.arange(1, C + 1, dtype=jnp.float32).reshape(1, C, 1, 1)

    # Deterministic parameter init matching BatchNorm.__init__ (num_dims=4):
    gamma = jnp.ones((1, C, 1, 1), dtype=jnp.float32)
    beta = jnp.zeros((1, C, 1, 1), dtype=jnp.float32)
    moving_mean = jnp.zeros((1, C, 1, 1), dtype=jnp.float32)
    moving_var = jnp.ones((1, C, 1, 1), dtype=jnp.float32)

    y, new_mm, new_mv = batch_norm_pallas(x, gamma, beta, moving_mean,
                                          moving_var)
    jax.block_until_ready((y, new_mm, new_mv))

    # Correctness check against a pure-JAX reference (training branch).
    y_ref, mm_ref, mv_ref = _reference_batch_norm(x, gamma, beta,
                                                  moving_mean, moving_var)
    assert jnp.allclose(y, y_ref, atol=1e-4, rtol=1e-4)
    assert jnp.allclose(new_mm, mm_ref, atol=1e-4, rtol=1e-4)
    assert jnp.allclose(new_mv, mv_ref, atol=1e-4, rtol=1e-4)

    # TODO(synk): eval-mode branch (normalize with moving stats, the
    # not-grad-enabled path of the PyTorch module) not implemented here.
    print("KERNEL_OK")
</pallas_src>

<mosaic_0001>
module attributes {stable_mosaic.version = 11 : i64} {
  func.func @_bn_kernel(%arg0: i32, %arg1: i32, %arg2: i32, %arg3: i32, %arg4: memref<2x4x256xf32, #tpu.memory_space<vmem>>, %arg5: memref<4x1xf32, #tpu.memory_space<vmem>>, %arg6: memref<4x1xf32, #tpu.memory_space<vmem>>, %arg7: memref<2x4x256xf32, #tpu.memory_space<vmem>>, %arg8: memref<4x1xf32, #tpu.memory_space<vmem>>, %arg9: memref<4x1xf32, #tpu.memory_space<vmem>>, %arg10: memref<4x1xf32, #tpu.memory_space<vmem>>, %arg11: memref<4x1xf32, #tpu.memory_space<vmem>>, %arg12: memref<4x1xf32, #tpu.memory_space<vmem>>, %arg13: memref<4x1xf32, #tpu.memory_space<vmem>>, %arg14: memref<4x1xf32, #tpu.memory_space<vmem>>, %arg15: memref<2x4x256xf32, #tpu.memory_space<vmem>>) attributes {dimension_semantics = [#tpu.dimension_semantics<parallel>, #tpu.dimension_semantics<arbitrary>, #tpu.dimension_semantics<arbitrary>, #tpu.dimension_semantics<arbitrary>], iteration_bounds = array<i64: 1, 2, 1, 1>, scalar_prefetch = 0 : i64, scratch_operands = 6 : i64, tpu.core_type = #tpu.core_type<tc>, window_params = [{transform_indices = @transform_0, window_bounds = array<i64: 2, 4, 256>}, {transform_indices = @transform_1, window_bounds = array<i64: 4, 1>}, {transform_indices = @transform_2, window_bounds = array<i64: 4, 1>}, {transform_indices = @transform_3, window_bounds = array<i64: 2, 4, 256>}, {transform_indices = @transform_4, window_bounds = array<i64: 4, 1>}, {transform_indices = @transform_5, window_bounds = array<i64: 4, 1>}]} {
    %c0_i32 = arith.constant 0 : i32
    %0 = arith.cmpi eq, %arg2, %c0_i32 : i32
    %c0_i32_0 = arith.constant 0 : i32
    %1 = arith.cmpi eq, %arg3, %c0_i32_0 : i32
    %2 = arith.andi %0, %1 : i1
    %c0_i32_1 = arith.constant 0 : i32
    %3 = arith.cmpi eq, %arg2, %c0_i32_1 : i32
    %c0_i32_2 = arith.constant 0 : i32
    %4 = arith.cmpi eq, %arg3, %c0_i32_2 : i32
    %5 = arith.andi %3, %4 : i1
    %c0_i32_3 = arith.constant 0 : i32
    %6 = arith.cmpi eq, %arg1, %c0_i32_3 : i32
    %7 = arith.andi %6, %2 : i1
    %8 = arith.extui %7 : i1 to i32
    %c0_i32_4 = arith.constant 0 : i32
    %9 = arith.cmpi ne, %8, %c0_i32_4 : i32
    scf.if %9 {
      %c0 = arith.constant 0 : index
      %c0_10 = arith.constant 0 : index
      %c0_11 = arith.constant 0 : index
      %20 = vector.load %arg4[%c0, %c0_10, %c0_11] : memref<2x4x256xf32, #tpu.memory_space<vmem>>, vector<2x4x256xf32>
      %cst = arith.constant dense<0.000000e+00> : vector<4xf32>
      %21 = vector.multi_reduction <add>, %20, %cst [0, 2] : vector<2x4x256xf32> to vector<4xf32>
      %22 = vector.shape_cast %21 : vector<4xf32> to vector<1x4x1xf32>
      %cst_12 = arith.constant 5.120000e+02 : f32
      %23 = vector.broadcast %cst_12 : f32 to vector<1x4x1xf32>
      %24 = arith.divf %22, %23 : vector<1x4x1xf32>
      %25 = vector.shape_cast %24 : vector<1x4x1xf32> to vector<4x1xf32>
      %c0_13 = arith.constant 0 : index
      %c0_14 = arith.constant 0 : index
      %26 = vector.load %arg10[%c0_13, %c0_14] : memref<4x1xf32, #tpu.memory_space<vmem>>, vector<4x1xf32>
      tpu.vector_store %arg10[%c0_13, %c0_14], %25 {strides = array<i32>} : memref<4x1xf32, #tpu.memory_space<vmem>>, vector<4x1xf32>,
      %cst_15 = arith.constant 0.000000e+00 : f32
      %27 = vector.broadcast %cst_15 : f32 to vector<4x1xf32>
      %c0_16 = arith.constant 0 : index
      %c0_17 = arith.constant 0 : index
      %28 = vector.load %arg11[%c0_16, %c0_17] : memref<4x1xf32, #tpu.memory_space<vmem>>, vector<4x1xf32>
      tpu.vector_store %arg11[%c0_16, %c0_17], %27 {strides = array<i32>} : memref<4x1xf32, #tpu.memory_space<vmem>>, vector<4x1xf32>,
      %cst_18 = arith.constant 0.000000e+00 : f32
      %29 = vector.broadcast %cst_18 : f32 to vector<4x1xf32>
      %c0_19 = arith.constant 0 : index
      %c0_20 = arith.constant 0 : index
      %30 = vector.load %arg12[%c0_19, %c0_20] : memref<4x1xf32, #tpu.memory_space<vmem>>, vector<4x1xf32>
      tpu.vector_store %arg12[%c0_19, %c0_20], %29 {strides = array<i32>} : memref<4x1xf32, #tpu.memory_space<vmem>>, vector<4x1xf32>,
    } else {
    }
    %c0_i32_5 = arith.constant 0 : i32
    %10 = arith.cmpi eq, %arg1, %c0_i32_5 : i32
    %11 = arith.extui %10 : i1 to i32
    %c0_i32_6 = arith.constant 0 : i32
    %12 = arith.cmpi ne, %11, %c0_i32_6 : i32
    scf.if %12 {
      %c0 = arith.constant 0 : index
      %c0_10 = arith.constant 0 : index
      %c0_11 = arith.constant 0 : index
      %20 = vector.load %arg4[%c0, %c0_10, %c0_11] : memref<2x4x256xf32, #tpu.memory_space<vmem>>, vector<2x4x256xf32>
      %c2_i32 = arith.constant 2 : i32
      %21 = arith.muli %arg2, %c2_i32 : i32
      %c256_i32 = arith.constant 256 : i32
      %22 = arith.muli %arg3, %c256_i32 : i32
      %23 = tpu.assume_multiple %22, 128 : i32
      %24 = arith.index_cast %21 : i32 to index
      %c0_12 = arith.constant 0 : index
      %25 = arith.index_cast %23 : i32 to index
      %26 = vector.load %arg15[%24, %c0_12, %25] : memref<2x4x256xf32, #tpu.memory_space<vmem>>, vector<2x4x256xf32>
      tpu.vector_store %arg15[%24, %c0_12, %25], %20 {strides = array<i32>} : memref<2x4x256xf32, #tpu.memory_space<vmem>>, vector<2x4x256xf32>,
      %c0_13 = arith.constant 0 : index
      %c0_14 = arith.constant 0 : index
      %27 = vector.load %arg10[%c0_13, %c0_14] : memref<4x1xf32, #tpu.memory_space<vmem>>, vector<4x1xf32>
      %28 = vector.shape_cast %27 : vector<4x1xf32> to vector<1x4x1xf32>
      %29 = vector.broadcast %28 : vector<1x4x1xf32> to vector<2x4x256xf32>
      %30 = arith.subf %20, %29 : vector<2x4x256xf32>
      %c0_15 = arith.constant 0 : index
      %c0_16 = arith.constant 0 : index
      %31 = vector.load %arg11[%c0_15, %c0_16] : memref<4x1xf32, #tpu.memory_space<vmem>>, vector<4x1xf32>
      %cst = arith.constant dense<0.000000e+00> : vector<4xf32>
      %32 = vector.multi_reduction <add>, %30, %cst [0, 2] : vector<2x4x256xf32> to vector<4xf32>
      %33 = vector.shape_cast %32 : vector<4xf32> to vector<1x4x1xf32>
      %34 = vector.shape_cast %33 : vector<1x4x1xf32> to vector<4x1xf32>
      %35 = arith.addf %31, %34 : vector<4x1xf32>
      %c0_17 = arith.constant 0 : index
      %c0_18 = arith.constant 0 : index
      %36 = vector.load %arg11[%c0_17, %c0_18] : memref<4x1xf32, #tpu.memory_space<vmem>>, vector<4x1xf32>
      tpu.vector_store %arg11[%c0_17, %c0_18], %35 {strides = array<i32>} : memref<4x1xf32, #tpu.memory_space<vmem>>, vector<4x1xf32>,
      %c0_19 = arith.constant 0 : index
      %c0_20 = arith.constant 0 : index
      %37 = vector.load %arg12[%c0_19, %c0_20] : memref<4x1xf32, #tpu.memory_space<vmem>>, vector<4x1xf32>
      %38 = arith.mulf %30, %30 : vector<2x4x256xf32>
      %cst_21 = arith.constant dense<0.000000e+00> : vector<4xf32>
      %39 = vector.multi_reduction <add>, %38, %cst_21 [0, 2] : vector<2x4x256xf32> to vector<4xf32>
      %40 = vector.shape_cast %39 : vector<4xf32> to vector<1x4x1xf32>
      %41 = vector.shape_cast %40 : vector<1x4x1xf32> to vector<4x1xf32>
      %42 = arith.addf %37, %41 : vector<4x1xf32>
      %c0_22 = arith.constant 0 : index
      %c0_23 = arith.constant 0 : index
      %43 = vector.load %arg12[%c0_22, %c0_23] : memref<4x1xf32, #tpu.memory_space<vmem>>, vector<4x1xf32>
      tpu.vector_store %arg12[%c0_22, %c0_23], %42 {strides = array<i32>} : memref<4x1xf32, #tpu.memory_space<vmem>>, vector<4x1xf32>,
    } else {
    }
    %c0_i32_7 = arith.constant 0 : i32
    %13 = arith.cmpi eq, %arg1, %c0_i32_7 : i32
    %14 = arith.andi %13, %5 : i1
    %15 = arith.extui %14 : i1 to i32
    %c0_i32_8 = arith.constant 0 : i32
    %16 = arith.cmpi ne, %15, %c0_i32_8 : i32
    scf.if %16 {
      %c0 = arith.constant 0 : index
      %c0_10 = arith.constant 0 : index
      %20 = vector.load %arg11[%c0, %c0_10] : memref<4x1xf32, #tpu.memory_space<vmem>>, vector<4x1xf32>
      %cst = arith.constant 0.001953125 : f32
      %21 = vector.broadcast %cst : f32 to vector<4x1xf32>
      %22 = arith.mulf %20, %21 : vector<4x1xf32>
      %c0_11 = arith.constant 0 : index
      %c0_12 = arith.constant 0 : index
      %23 = vector.load %arg12[%c0_11, %c0_12] : memref<4x1xf32, #tpu.memory_space<vmem>>, vector<4x1xf32>
      %cst_13 = arith.constant 0.001953125 : f32
      %24 = vector.broadcast %cst_13 : f32 to vector<4x1xf32>
      %25 = arith.mulf %23, %24 : vector<4x1xf32>
      %26 = arith.mulf %22, %22 : vector<4x1xf32>
      %27 = arith.subf %25, %26 : vector<4x1xf32>
      %cst_14 = arith.constant 0.000000e+00 : f32
      %28 = vector.broadcast %cst_14 : f32 to vector<4x1xf32>
      %29 = arith.maximumf %27, %28 : vector<4x1xf32>
      %c0_15 = arith.constant 0 : index
      %c0_16 = arith.constant 0 : index
      %30 = vector.load %arg10[%c0_15, %c0_16] : memref<4x1xf32, #tpu.memory_space<vmem>>, vector<4x1xf32>
      %31 = arith.addf %30, %22 : vector<4x1xf32>
      %cst_17 = arith.constant 9.99999974E-6 : f32
      %32 = vector.broadcast %cst_17 : f32 to vector<4x1xf32>
      %33 = arith.addf %29, %32 : vector<4x1xf32>
      %34 = math.rsqrt %33 : vector<4x1xf32>
      %c0_18 = arith.constant 0 : index
      %c0_19 = arith.constant 0 : index
      %35 = vector.load %arg5[%c0_18, %c0_19] : memref<4x1xf32, #tpu.memory_space<vmem>>, vector<4x1xf32>
      %36 = arith.mulf %35, %34 : vector<4x1xf32>
      %c0_20 = arith.constant 0 : index
      %c0_21 = arith.constant 0 : index
      %37 = vector.load %arg13[%c0_20, %c0_21] : memref<4x1xf32, #tpu.memory_space<vmem>>, vector<4x1xf32>
      tpu.vector_store %arg13[%c0_20, %c0_21], %36 {strides = array<i32>} : memref<4x1xf32, #tpu.memory_space<vmem>>, vector<4x1xf32>,
      %c0_22 = arith.constant 0 : index
      %c0_23 = arith.constant 0 : index
      %38 = vector.load %arg6[%c0_22, %c0_23] : memref<4x1xf32, #tpu.memory_space<vmem>>, vector<4x1xf32>
      %39 = arith.mulf %31, %36 : vector<4x1xf32>
      %40 = arith.subf %38, %39 : vector<4x1xf32>
      %c0_24 = arith.constant 0 : index
      %c0_25 = arith.constant 0 : index
      %41 = vector.load %arg14[%c0_24, %c0_25] : memref<4x1xf32, #tpu.memory_space<vmem>>, vector<4x1xf32>
      tpu.vector_store %arg14[%c0_24, %c0_25], %40 {strides = array<i32>} : memref<4x1xf32, #tpu.memory_space<vmem>>, vector<4x1xf32>,
      %c0_26 = arith.constant 0 : index
      %c0_27 = arith.constant 0 : index
      %42 = vector.load %arg8[%c0_26, %c0_27] : memref<4x1xf32, #tpu.memory_space<vmem>>, vector<4x1xf32>
      tpu.vector_store %arg8[%c0_26, %c0_27], %31 {strides = array<i32>} : memref<4x1xf32, #tpu.memory_space<vmem>>, vector<4x1xf32>,
      %c0_28 = arith.constant 0 : index
      %c0_29 = arith.constant 0 : index
      %43 = vector.load %arg9[%c0_28, %c0_29] : memref<4x1xf32, #tpu.memory_space<vmem>>, vector<4x1xf32>
      tpu.vector_store %arg9[%c0_28, %c0_29], %29 {strides = array<i32>} : memref<4x1xf32, #tpu.memory_space<vmem>>, vector<4x1xf32>,
    } else {
    }
    %c1_i32 = arith.constant 1 : i32
    %17 = arith.cmpi eq, %arg1, %c1_i32 : i32
    %18 = arith.extui %17 : i1 to i32
    %c0_i32_9 = arith.constant 0 : i32
    %19 = arith.cmpi ne, %18, %c0_i32_9 : i32
    scf.if %19 {
      %c2_i32 = arith.constant 2 : i32
      %20 = arith.muli %arg2, %c2_i32 : i32
      %c256_i32 = arith.constant 256 : i32
      %21 = arith.muli %arg3, %c256_i32 : i32
      %22 = tpu.assume_multiple %21, 128 : i32
      %23 = arith.index_cast %20 : i32 to index
      %c0 = arith.constant 0 : index
      %24 = arith.index_cast %22 : i32 to index
      %25 = vector.load %arg15[%23, %c0, %24] : memref<2x4x256xf32, #tpu.memory_space<vmem>>, vector<2x4x256xf32>
      %c0_10 = arith.constant 0 : index
      %c0_11 = arith.constant 0 : index
      %26 = vector.load %arg13[%c0_10, %c0_11] : memref<4x1xf32, #tpu.memory_space<vmem>>, vector<4x1xf32>
      %27 = vector.shape_cast %26 : vector<4x1xf32> to vector<1x4x1xf32>
      %28 = vector.broadcast %27 : vector<1x4x1xf32> to vector<2x4x256xf32>
      %29 = arith.mulf %25, %28 : vector<2x4x256xf32>
      %c0_12 = arith.constant 0 : index
      %c0_13 = arith.constant 0 : index
      %30 = vector.load %arg14[%c0_12, %c0_13] : memref<4x1xf32, #tpu.memory_space<vmem>>, vector<4x1xf32>
      %31 = vector.shape_cast %30 : vector<4x1xf32> to vector<1x4x1xf32>
      %32 = vector.broadcast %31 : vector<1x4x1xf32> to vector<2x4x256xf32>
      %33 = arith.addf %29, %32 : vector<2x4x256xf32>
      %c0_14 = arith.constant 0 : index
      %c0_15 = arith.constant 0 : index
      %c0_16 = arith.constant 0 : index
      %34 = vector.load %arg7[%c0_14, %c0_15, %c0_16] : memref<2x4x256xf32, #tpu.memory_space<vmem>>, vector<2x4x256xf32>
      tpu.vector_store %arg7[%c0_14, %c0_15, %c0_16], %33 {strides = array<i32>} : memref<2x4x256xf32, #tpu.memory_space<vmem>>, vector<2x4x256xf32>,
    } else {
    }
    return
  }
  func.func @transform_0(%arg0: i32, %arg1: i32, %arg2: i32, %arg3: i32) -> (i32, i32, i32) {
    %c1_i32 = arith.constant 1 : i32
    %0 = arith.subi %c1_i32, %arg1 : i32
    %1 = arith.muli %arg2, %0 : i32
    %c1_i32_0 = arith.constant 1 : i32
    %2 = arith.subi %c1_i32_0, %arg1 : i32
    %3 = arith.muli %arg3, %2 : i32
    %c0_i32 = arith.constant 0 : i32
    return %1, %arg0, %3 : i32, i32, i32
  }
  func.func @transform_1(%arg0: i32, %arg1: i32, %arg2: i32, %arg3: i32) -> (i32, i32) {
    %c0_i32 = arith.constant 0 : i32
    %c0_i32_0 = arith.constant 0 : i32
    return %arg0, %c0_i32 : i32, i32
  }
  func.func @transform_2(%arg0: i32, %arg1: i32, %arg2: i32, %arg3: i32) -> (i32, i32) {
    %c0_i32 = arith.constant 0 : i32
    %c0_i32_0 = arith.constant 0 : i32
    return %arg0, %c0_i32 : i32, i32
  }
  func.func @transform_3(%arg0: i32, %arg1: i32, %arg2: i32, %arg3: i32) -> (i32, i32, i32) {
    %0 = arith.muli %arg2, %arg1 : i32
    %1 = arith.muli %arg3, %arg1 : i32
    %c0_i32 = arith.constant 0 : i32
    return %0, %arg0, %1 : i32, i32, i32
  }
  func.func @transform_4(%arg0: i32, %arg1: i32, %arg2: i32, %arg3: i32) -> (i32, i32) {
    %c0_i32 = arith.constant 0 : i32
    %c0_i32_0 = arith.constant 0 : i32
    return %arg0, %c0_i32 : i32, i32
  }
  func.func @transform_5(%arg0: i32, %arg1: i32, %arg2: i32, %arg3: i32) -> (i32, i32) {
    %c0_i32 = arith.constant 0 : i32
    %c0_i32_0 = arith.constant 0 : i32
    return %arg0, %c0_i32 : i32, i32
  }
}

</mosaic_0001>

<bundles_post_ra>
// kernel: tpu_custom_call.1
= control target key start
LH: loop header
LB: loop body
LE: loop exit
PB: predicated region body
PF: predicated region fallthrough
CT: control target
= control target key end

     0   :  { %11 = vsyncpa [#allocation9], 0  ;;  %s1069_s0 = inlined_call_operand.hbm [shape: f32[2,4,256], index: 0, kind: input, shape index: {}]   ;;  %s1070_s1 = inlined_call_operand.vmem [shape: f32[4,1], index: 1, kind: input, shape index: {}]   ;;  %s1071_s2 = inlined_call_operand.vmem [shape: f32[4,1], index: 2, kind: input, shape index: {}]   ;;  %s1072_s3 = inlined_call_operand.hbm [shape: f32[2,4,256], index: 3, kind: output, shape index: {0}]   ;;  %s1073_s4 = inlined_call_operand.vmem [shape: f32[4,1], index: 4, kind: output, shape index: {1}]   ;;  %s1074_s5 = inlined_call_operand.vmem [shape: f32[4,1], index: 5, kind: output, shape index: {2}]  }
   0x1   :  { %13 = vsyncpa [#allocation9 + $0x1], 0 }
   0x2   :  { %14 = vsyncpa [#allocation10], 0 }
   0x3   :  { %16 = vsyncpa [#allocation10 + $0x1], 0  ;;  %s952_s18 = smov 0   ;;  %s954_s19 = smov 0  }
   0x4   :  { %s956_s20 = smov 0  }
   0x5 LB: > { %s743_s21 = sadd.s32 4294967295, %s909_s20   ;;  %s744_s22 = sadd.s32 4294967294, %s909_s20   ;;  %s909_s20 = sphi %s956_s20, %s22_s20   ;;  %s905_s19 = sphi %s954_s19, %s1080_s19   ;;  %s901_s18 = sphi %s952_s18, %s1079_s18  }
   0x6   : > { %s44_s23 = sadd.s32 1, %s905_s19  ;;  %p778_p2 = scmp.lt.s32.totalorder %s909_s20, 2 }
   0x7   : > { %p46_p1 = scmp.ge.s32.totalorder %s44_s23, 2  ;;  %p779_p3 = scmp.eq.s32.totalorder %s909_s20, 0 }
   0x8   : > { %s911_s25 = smov [#allocation8]   ;;  %s825_s29 = scalar_lea.hbm %s1069_s0, 256 }
   0x9   : > { %s1082_s23 = smov (%p46_p1, %s44_s23), 0  ;;  %p975_p4 = pnand %p779_p3, %p778_p2 }
   0xa   : > { %s273_s26 = sshll.u32 %s911_s25, 4  ;;  %p826_p6 = scmp.ne.s32.totalorder %s1069_s0, %s825_s29  ;;  %s274_s26 = int_to_ptr.vmem [resolvable:$true] %s273_s26 }
   0xb   : > { %p827_p7 = pneg %p975_p4  ;;  %p832_p10 = scmp.lt.u32.totalorder %s825_s29, %s1069_s0 }
   0xd   : > { %p828_p8 = pnand %p827_p7, %p826_p6 }
   0xf   : > { %p829_p9 = pneg %p828_p8 }
  0x11   : > { %p834_p11 = pnand %p832_p10, %p829_p9 }
  0x13   : > { %837 = shalt.err (!%p834_p11)
}
  0x14   : > { %s838_s9 = scalar_lea.vmem %s274_s26, 256  ;;  %s845_s10 = scalar_lea.vmem %s274_s26, 512 }
  0x15   : > { %p839_p12 = scmp.ne.s32.totalorder %s274_s26, %s838_s9  ;;  %p846_p2 = scmp.lt.s32.totalorder %s274_s26, %s274_s26 }
  0x16   : > { %p847_p3 = scmp.lt.s32.totalorder %s845_s10, %s838_s9 }
  0x17   : > { %p841_p13 = pnand %p839_p12, %p827_p7 }
  0x18   : > { %p848_p0 = por %p847_p3, %p846_p2 }
  0x19   : > { %p842_p1 = pneg %p841_p13 }
  0x1b   : > { %p849_p5 = pnand %p848_p0, %p842_p1 }
  0x1d   : > { %852 = shalt.err (!%p849_p5)
}
  0x1e   : > { %s912_s11 = smov 128   ;;  %s913_s12 = smov 8  }
  0x1f   : > { %773 = dma.hbm_to_vmem [thread:$0]  (!%p975_p4), %s1069_s0, 256, %s274_s26, [#allocation9], %s912_s11, %s912_s11, %s913_s12  }
  0x20   : > { %p281_p6 = scmp.lt.s32.totalorder %s909_s20, 3  ;;  %p1076_p8 = scmp.ge.s32.totalorder %s909_s20, 1 }
  0x22   : > { %p282_p7 = pnand %p1076_p8, %p281_p6 }
  0x23   : > { %p780_p9 = scmp.eq.s32.totalorder (!%p282_p7), %s743_s21, 0 }
  0x24   : > { %285 = sbr.rel (%p282_p7) target bundleno = 692 (0x2b4), region = 32 }
  0x2b   : > { %892 = dma.done.wait (%p780_p9), [#allocation9], 256  }
  0x2c   : > { %894 = vsyncadd (%p780_p9), [#allocation9], 4294967040  ;;  %p363_p0 = scmp.eq.s32.totalorder %s901_s18, 0 }
  0x2d   : > { %v368_v0 = vld [vmem:[#allocation8] sm:$0xff] (%p363_p0)  ;;  %v369_v1 = vld [vmem:[#allocation8 + $0x8] sm:$0xff] (%p363_p0)  ;;  %vm376_vm0 = vcmask (%p363_p0), 1043456   ;;  %vm388_vm1 = vcmask (%p363_p0), 3072   ;;  %v914_v11 = vmov (%p363_p0), 0.0  }
  0x2e   : > { %367 = sbr.rel (!%p363_p0) target bundleno = 200 (0xc8), region = 40  ;;  %v372_v2 = vcombine.high (%p363_p0), %v368_v0, %v368_v0  ;;  %v373_v3 = vcombine.high (%p363_p0), %v369_v1, %v369_v1  ;;  %v377_v4 = vsel (%p363_p0), %vm376_vm0, %v368_v0, 0.0  ;;  %v380_v6 = vsel (%p363_p0), %vm376_vm0, %v369_v1, 0.0  ;;  %390 = vst.msk [vmem:[#allocation3] sm:$0xf] (%p363_p0), %vm388_vm1, %v914_v11 }
  0x2f   : > { %391 = vst.msk [vmem:[#allocation4] sm:$0xf] (%p363_p0), %vm388_vm1, %v914_v11 }
  0x30   : > { %v378_v5 = vsel (%p363_p0), %vm376_vm0, %v372_v2, 0.0  ;;  %v382_v8 = vsel (%p363_p0), %vm376_vm0, %v373_v3, 0.0 }
  0x31   : > { %v379_v7 = vadd.f32 (%p363_p0), %v378_v5, %v377_v4 }
  0x33   : > { %v381_v9 = vadd.f32 (%p363_p0), %v380_v6, %v379_v7 }
  0x35   : > { %v383_v10 = vadd.f32 %v382_v8, %v381_v9 }
  0x37   : > { %384 = vadd.xlane.f32.xlu0 %v383_v10 }
  0xc4   : > { %v385_v12 = vpop.xlane.xlu0 %384 }
  0xc5   : > { %v387_v13 = vmul.f32 0.001953125, %v385_v12 }
  0xc7   : > { %389 = vst.msk [vmem:[#allocation2] sm:$0xf] %vm388_vm1, %v387_v13 }
  0xc8 PF: > { %p753_p4 = scmp.ne.s32.totalorder %s901_s18, 0 }
  0xc9   : > { %v915_v15 = vmov (!%p753_p4), 0   ;;  %v395_v16 = vld [vmem:[#allocation8] sm:$0xff] (!%p753_p4)  ;;  %v396_v17 = vld [vmem:[#allocation8 + $0x8] sm:$0xff] (!%p753_p4)  ;;  %v916_v18 = vmov (!%p753_p4), 839922192   ;;  %v415_v20 = vlaneseq (!%p753_p4)  ;;  %vm429_vm2 = vcmask (!%p753_p4), 1043456  }
  0xca   : > { %394 = sbr.rel (%p753_p4) target bundleno = 495 (0x1ef), region = 44  ;;  %821 = vset.pattern.permute.xlu0 (!%p753_p4), %v915_v15  ;;  %405 = vst [vmem:[#allocation7] sm:$0xff] (!%p753_p4), %v395_v16  ;;  %406 = vst [vmem:[#allocation7 + $0x8] sm:$0xff] (!%p753_p4), %v396_v17  ;;  %v413_v19 = vunpack.c.l.s4 (!%p753_p4), %v916_v18  ;;  %v422_v48 = vld [vmem:[#allocation3] sm:$0xf] (!%p753_p4)  ;;  %vm440_vm3 = vcmask (!%p753_p4), 3072  }
  0xcb   : > { %v416_v22 = vshrl.u32 (!%p753_p4), %v415_v20, 7  ;;  %v442_v51 = vld [vmem:[#allocation4] sm:$0xf] (!%p753_p4) }
  0xcc   : > { %v414_v21 = vunpack.c.0.s8 (!%p753_p4), %v413_v19 }
  0xce   : > { %v407_v14 = vld [vmem:[#allocation2] sm:$0xf] (!%p753_p4)  ;;  %v417_v23 = vsub.s32 (!%p753_p4), %v414_v21, %v416_v22 }
  0xcf   : > { %410 = vperm.xlu0 (!%p753_p4), %821, %v407_v14  }
 0x14e   : > { %v411_v24 = vpop.permute.xlu0 %410 }
 0x14f   : > { %v418_v25 = vrot.slane %v411_v24, %v417_v23 }
 0x151   : > { %v420_v26 = vsub.f32 %v395_v16, %v418_v25  ;;  %v421_v27 = vsub.f32 %v396_v17, %v418_v25 }
 0x153   : > { %v425_v28 = vcombine.high %v420_v26, %v420_v26  ;;  %v443_v29 = vmul.f32 %v420_v26, %v420_v26  ;;  %v444_v30 = vmul.f32 %v421_v27, %v421_v27  ;;  %v426_v31 = vcombine.high %v421_v27, %v421_v27 }
 0x154   : > { %v430_v32 = vsel %vm429_vm2, %v420_v26, 0.0  ;;  %v433_v36 = vsel %vm429_vm2, %v421_v27, 0.0 }
 0x155   : > { %v431_v33 = vsel %vm429_vm2, %v425_v28, 0.0  ;;  %v447_v35 = vcombine.high %v443_v29, %v443_v29  ;;  %v448_v38 = vcombine.high %v444_v30, %v444_v30  ;;  %v451_v39 = vsel %vm429_vm2, %v443_v29, 0.0 }
 0x156   : > { %v432_v34 = vadd.f32 %v431_v33, %v430_v32  ;;  %v435_v41 = vsel %vm429_vm2, %v426_v31, 0.0  ;;  %v454_v44 = vsel %vm429_vm2, %v444_v30, 0.0 }
 0x157   : > { %v452_v40 = vsel %vm429_vm2, %v447_v35, 0.0  ;;  %v456_v46 = vsel %vm429_vm2, %v448_v38, 0.0 }
 0x158   : > { %v434_v37 = vadd.f32 %v433_v36, %v432_v34  ;;  %v453_v42 = vadd.f32 %v452_v40, %v451_v39 }
 0x15a   : > { %v436_v43 = vadd.f32 %v435_v41, %v434_v37  ;;  %v455_v45 = vadd.f32 %v454_v44, %v453_v42 }
 0x15c   : > { %437 = vadd.xlane.f32.xlu0 %v436_v43  ;;  %v457_v47 = vadd.f32 %v456_v46, %v455_v45 }
 0x15e   : > { %458 = vadd.xlane.f32.xlu1 %v457_v47 }
 0x1e9   : > { %v438_v49 = vpop.xlane.xlu0 %437 }
 0x1ea   : > { %v439_v50 = vadd.f32 %v438_v49, %v422_v48 }
 0x1eb   : > { %v459_v52 = vpop.xlane.xlu1 %458 }
 0x1ec   : > { %441 = vst.msk [vmem:[#allocation3] sm:$0xf] %vm440_vm3, %v439_v50  ;;  %v460_v53 = vadd.f32 %v459_v52, %v442_v51 }
 0x1ee   : > { %461 = vst.msk [vmem:[#allocation4] sm:$0xf] %vm440_vm3, %v460_v53 }
 0x1ef PF: > { %463 = sbr.rel (!%p363_p0) target bundleno = 528 (0x210), region = 48  ;;  %v471_v58 = vld [vmem:[#allocation2] sm:$0xf] (%p363_p0)  ;;  %vm477_vm4 = vcmask (%p363_p0), 3072  }
 0x1f0   : > { %v475_v0 = vld [vmem:[%s1070_s1] sm:$0xf] (%p363_p0) }
 0x1f1   : > { %v479_v3 = vld [vmem:[%s1071_s2] sm:$0xf] (%p363_p0) }
 0x1f3   : > { %v464_v54 = vld [vmem:[#allocation3] sm:$0xf] (%p363_p0) }
 0x1f4   : > { %v465_v56 = vmul.f32 (%p363_p0), 0.001953125, %v464_v54 }
 0x1f5   : > { %v466_v55 = vld [vmem:[#allocation4] sm:$0xf] (%p363_p0) }
 0x1f6   : > { %v467_v57 = vmul.f32 0.001953125, %v466_v55  ;;  %v468_v59 = vmul.f32 %v465_v56, %v465_v56  ;;  %v472_v60 = vadd.f32 %v471_v58, %v465_v56 }
 0x1f8   : > { %v469_v61 = vsub.f32 %v467_v57, %v468_v59  ;;  %483 = vst.msk [vmem:[%s1073_s4] sm:$0xf] %vm477_vm4, %v472_v60 }
 0x1fa   : > { %v470_v62 = vmax.f32 %v469_v61, 0.0 }
 0x1fc   : > { %v473_v63 = vadd.f32 1e-05, %v470_v62  ;;  %484 = vst.msk [vmem:[%s1074_s5] sm:$0xf] %vm477_vm4, %v470_v62 }
 0x1fe   : > { %822 = vrsqrt.f32 %v473_v63 }
 0x208   : > { %v823_v1 = vpop.eup %822 }
 0x209   : > { %v476_v2 = vmul.f32 %v823_v1, %v475_v0 }
 0x20b   : > { %478 = vst.msk [vmem:[#allocation5] sm:$0xf] %vm477_vm4, %v476_v2  ;;  %v480_v4 = vmul.f32 %v476_v2, %v472_v60 }
 0x20d   : > { %v481_v5 = vsub.f32 %v479_v3, %v480_v4 }
 0x20f   : > { %482 = vst.msk [vmem:[#allocation6] sm:$0xf] %vm477_vm4, %v481_v5 }
 0x210 PF: > { %p754_p5 = scmp.ne.s32.totalorder %s901_s18, 1 }
 0x211   : > { %v917_v7 = vmov (!%p754_p5), 0   ;;  %v918_v9 = vmov (!%p754_p5), 839922192   ;;  %v507_v11 = vlaneseq (!%p754_p5)  ;;  %v497_v17 = vld [vmem:[#allocation7] sm:$0xff] (!%p754_p5)  ;;  %v498_v18 = vld [vmem:[#allocation7 + $0x8] sm:$0xff] (!%p754_p5) }
 0x212   : > { %488 = sbr.rel (%p754_p5) target bundleno = 668 (0x29c), region = 52  ;;  %v499_v6 = vld [vmem:[#allocation5] sm:$0xf] (!%p754_p5)  ;;  %824 = vset.pattern.permute.xlu0 (!%p754_p5), %v917_v7  ;;  %v505_v10 = vunpack.c.l.s4 (!%p754_p5), %v918_v9 }
 0x213   : > { %502 = vperm.xlu0 (!%p754_p5), %824, %v499_v6   ;;  %v508_v13 = vshrl.u32 (!%p754_p5), %v507_v11, 7 }
 0x214   : > { %v506_v12 = vunpack.c.0.s8 (!%p754_p5), %v505_v10 }
 0x216   : > { %v514_v8 = vld [vmem:[#allocation6] sm:$0xf] (!%p754_p5)  ;;  %v509_v14 = vsub.s32 (!%p754_p5), %v506_v12, %v508_v13 }
 0x217   : > { %517 = vperm.xlu0 (!%p754_p5), %824, %v514_v8  }
 0x292   : > { %v503_v15 = vpop.permute.xlu0 %502 }
 0x293   : > { %v510_v16 = vrot.slane %v503_v15, %v509_v14 }
 0x295   : > { %v512_v20 = vmul.f32 %v510_v16, %v497_v17  ;;  %v513_v21 = vmul.f32 %v510_v16, %v498_v18 }
 0x296   : > { %v518_v19 = vpop.permute.xlu0 %517 }
 0x297   : > { %v525_v22 = vrot.slane %v518_v19, %v509_v14 }
 0x299   : > { %v527_v23 = vadd.f32 %v525_v22, %v512_v20  ;;  %v528_v24 = vadd.f32 %v525_v22, %v513_v21 }
 0x29b   : > { %529 = vst [vmem:[#allocation11] sm:$0xff] %v527_v23  ;;  %530 = vst [vmem:[#allocation11 + $0x8] sm:$0xff] %v528_v24 }
 0x29c PF: > { %p1034_p10 = scmp.eq.s32.totalorder %s743_s21, 1  ;;  %s919_s29 = smov [#allocation11]  }
 0x29d   : > { %s560_s30 = sshll.u32 %s919_s29, 4  ;;  %s561_s30 = int_to_ptr.vmem [resolvable:$true] %s560_s30 }
 0x29e   : > { %s853_s6 = scalar_lea.vmem %s561_s30, 256  ;;  %s859_s7 = scalar_lea.vmem %s561_s30, 512 }
 0x29f   : > { %p854_p11 = scmp.ne.s32.totalorder %s561_s30, %s853_s6  ;;  %p860_p1 = scmp.lt.s32.totalorder %s561_s30, %s561_s30 }
 0x2a0   : > { %p861_p2 = scmp.lt.s32.totalorder %s859_s7, %s853_s6 }
 0x2a1   : > { %p855_p12 = pnand %p854_p11, %p1034_p10 }
 0x2a2   : > { %p862_p3 = por %p861_p2, %p860_p1 }
 0x2a3   : > { %p856_p13 = pneg %p855_p12 }
 0x2a5   : > { %p863_p6 = pnand %p862_p3, %p856_p13 }
 0x2a7   : > { %866 = shalt.err (!%p863_p6)
}
 0x2a8   : > { %s867_s9 = scalar_lea.hbm %s1072_s3, 256 }
 0x2a9   : > { %p868_p8 = scmp.ne.s32.totalorder %s1072_s3, %s867_s9  ;;  %p873_p0 = scmp.lt.u32.totalorder %s867_s9, %s1072_s3 }
 0x2ab   : > { %p869_p7 = pnand %p868_p8, %p1034_p10 }
 0x2ad   : > { %p870_p9 = pneg %p869_p7 }
 0x2af   : > { %p875_p4 = pnand %p873_p0, %p870_p9 }
 0x2b1   : > { %878 = shalt.err (!%p875_p4)
}
 0x2b2   : > { %s920_s14 = smov 128   ;;  %s921_s15 = smov 8  }
 0x2b3   : > { %767 = dma.vmem_to_hbm [thread:$0]  (%p1034_p10), %s561_s30, 256, %s1072_s3, [#allocation10], %s920_s14, %s920_s14, %s921_s15  }
 0x2b4 PF: > { %p783_p5 = scmp.eq.s32.totalorder %s744_s22, 1  ;;  %p1078_p11 = scmp.ge.s32.totalorder %s909_s20, 2 }
 0x2b6   : > { %p775_p12 = pnand %p783_p5, %p1078_p11 }
 0x2b8   : > { %896 = dma.done.wait (!%p775_p12), [#allocation10], 256  }
 0x2b9   : > { %898 = vsyncadd (!%p775_p12), [#allocation10], 4294967040  ;;  %s22_s20 = sadd.s32 1, %s909_s20   ;;  %s1079_s18 = smov %s905_s19 }
 0x2ba   : > { %p19_p13 = scmp.ge.s32.totalorder %s22_s20, 4   ;;  %s1080_s19 = smov %s1082_s23 }
 0x2bc   :  { %21 = sbr.rel (!%p19_p13) target bundleno = 5 (0x5), region = 125 }
 0x2c3   :  { %601 = vsyncpa [#allocation9], 1 }
 0x2c4   :  { %603 = vsyncpa [#allocation9 + $0x1], 1 }
 0x2c5   :  { %604 = vsyncpa [#allocation10], 1 }
 0x2c6   :  { %606 = vsyncpa [#allocation10 + $0x1], 1 }

</bundles_post_ra>
